<compile_context>
chip_gen: v6e
topology: v6e:2x2x1
jax: 0.10.0
libtpu: 0.0.40
codegen_flags: <defaults>
</compile_context>

<pallas_src>
import functools
import math

import jax
import jax.numpy as jnp
from jax.experimental import pallas as pl
from jax.experimental.pallas import tpu as pltpu


def _round_up(a: int, b: int) -> int:
    return (a + b - 1) // b * b


def _freq_bands(n_freqs: int, log_space: bool):
    """Static Python floats matching torch.linspace semantics."""
    if n_freqs <= 0:
        return ()
    if n_freqs == 1:
        return (1.0,)
    if log_space:
        return tuple(2.0 ** i for i in range(n_freqs))
    lo, hi = 2.0 ** 0.0, 2.0 ** (n_freqs - 1)
    step = (hi - lo) / (n_freqs - 1)
    return tuple(lo + i * step for i in range(n_freqs))


def _pos_encode_kernel(x_ref, o_ref, *, freqs):
    # x_ref: (TR, C) input tile; o_ref: (K, TR, C) output slab, K = 1 + 2*len(freqs).
    x = x_ref[...]
    o_ref[0, :, :] = x.astype(o_ref.dtype)          # identity channel
    xf32 = x.astype(jnp.float32)
    # TODO(synk): on v7x (compute-bound after the layout fix) the higher frequency
    # bands could be derived from the base band via angle-doubling/addition
    # recurrences to cut EUP sin/cos count; kept as direct sin/cos to match the
    # reference numerics exactly.
    for i, f in enumerate(freqs):                   # static unroll, n_freqs small
        ang = xf32 * f
        o_ref[1 + 2 * i, :, :] = jnp.sin(ang).astype(o_ref.dtype)
        o_ref[2 + 2 * i, :, :] = jnp.cos(ang).astype(o_ref.dtype)


def positional_encoder(x, n_freqs: int, log_space: bool = False, *,
                       lane_width: int = 512,
                       vmem_budget_bytes: int = 20 * 1024 * 1024):
    """JAX/Pallas equivalent of PositionalEncoder.forward.

    x: [..., d_input]  ->  [..., d_input * (1 + 2*n_freqs)]
    """
    d_input = x.shape[-1]
    K = 1 + 2 * n_freqs
    d_output = d_input * K
    freqs = _freq_bands(n_freqs, log_space)

    lead_shape = x.shape[:-1]
    N = int(math.prod(lead_shape)) if lead_shape else 1
    M = N * d_input

    itemsize = jnp.dtype(x.dtype).itemsize
    sub = {4: 8, 2: 16, 1: 32}.get(itemsize, 8)     # sublane multiple per dtype

    # Lane width: multiple of 128, no wider than needed for tiny inputs.
    C = min(lane_width, _round_up(M, 128))
    M_pad = _round_up(M, C)                          # pad < C elements (not a full tile)
    R = M_pad // C

    x_flat = x.reshape(M)
    if M_pad != M:
        x_flat = jnp.pad(x_flat, (0, M_pad - M))
    x2 = x_flat.reshape(R, C)

    # Row-tile selection: as large as the VMEM budget allows (double-buffered
    # input + (1+2F)-wide output), but keep >= ~4 grid steps for megacore.
    if R < sub:
        TR = R                                       # full-dim block (always legal)
    else:
        bytes_per_row = 2 * C * itemsize * (1 + K)   # double-buffered in+out per row
        tr_cap = max(sub, (vmem_budget_bytes // bytes_per_row) // sub * sub)
        TR = min(tr_cap, max(sub, _round_up(pl.cdiv(R, 4), sub)))
    grid = (pl.cdiv(R, TR),)                         # last block auto-masked if needed

    kernel = functools.partial(_pos_encode_kernel, freqs=freqs)

    cost = pl.CostEstimate(
        flops=M * max(n_freqs, 1),
        transcendentals=2 * n_freqs * M,
        bytes_accessed=M * itemsize * (1 + K),
    )

    out_slab = pl.pallas_call(
        kernel,
        out_shape=jax.ShapeDtypeStruct((K, R, C), x.dtype),
        grid_spec=pltpu.PrefetchScalarGridSpec(
            num_scalar_prefetch=0,
            grid=grid,
            in_specs=[pl.BlockSpec((TR, C), lambda i: (i, 0))],
            out_specs=pl.BlockSpec((K, TR, C), lambda i: (0, i, 0)),
        ),
        compiler_params=pltpu.CompilerParams(
            dimension_semantics=("parallel",),
            vmem_limit_bytes=32 * 1024 * 1024,
        ),
        cost_estimate=cost,
    )(x2)

    # Restore PyTorch channel order: out[n, k*d + c] = slab[k, n*d + c].
    out = out_slab.reshape(K, M_pad)[:, :M].reshape(K, N, d_input)
    out = jnp.transpose(out, (1, 0, 2)).reshape(*lead_shape, d_output)
    return out


def _reference(x, n_freqs, log_space=False):
    parts = [x]
    for f in _freq_bands(n_freqs, log_space):
        parts.append(jnp.sin(x * f))
        parts.append(jnp.cos(x * f))
    return jnp.concatenate(parts, axis=-1)


if __name__ == "__main__":
    key = jax.random.PRNGKey(0)

    # Small demo consistent with the module: batch=2, seq=8, d_input=4, n_freqs=4.
    batch, seq, d_input, n_freqs = 2, 8, 4, 4        # d_output = 4 * (1 + 2*4) = 36
    k1, k2 = jax.random.split(key)
    x = jax.random.normal(k1, (batch, seq, d_input), dtype=jnp.float32)

    out = positional_encoder(x, n_freqs=n_freqs, log_space=False)
    out = jax.block_until_ready(out)
    assert out.shape == (batch, seq, d_input * (1 + 2 * n_freqs)), out.shape
    ref = _reference(x, n_freqs, log_space=False)
    assert jnp.allclose(out, ref, atol=1e-5, rtol=1e-5), "mismatch vs reference (small)"

    # Medium test: exercises multi-step grid, lane padding and the masked last block.
    x2 = jax.random.normal(k2, (4, 1111, 3), dtype=jnp.float32)
    out2 = positional_encoder(x2, n_freqs=6, log_space=True)
    out2 = jax.block_until_ready(out2)
    ref2 = _reference(x2, 6, log_space=True)
    assert out2.shape == (4, 1111, 3 * (1 + 2 * 6)), out2.shape
    assert jnp.allclose(out2, ref2, atol=1e-5, rtol=1e-5), "mismatch vs reference (medium)"

    print("KERNEL_OK")
</pallas_src>

<mosaic_0001>
module attributes {stable_mosaic.version = 11 : i64} {
  func.func @_pos_encode_kernel(%arg0: i32, %arg1: memref<1x128xf32, #tpu.memory_space<vmem>>, %arg2: memref<9x1x128xf32, #tpu.memory_space<vmem>>) attributes {dimension_semantics = [#tpu.dimension_semantics<parallel>], iteration_bounds = array<i64: 1>, scalar_prefetch = 0 : i64, scratch_operands = 0 : i64, tpu.core_type = #tpu.core_type<tc>, window_params = [{transform_indices = @transform_0, window_bounds = array<i64: 1, 128>}, {transform_indices = @transform_1, window_bounds = array<i64: 9, 1, 128>}]} {
    %c0 = arith.constant 0 : index
    %c0_0 = arith.constant 0 : index
    %0 = vector.load %arg1[%c0, %c0_0] : memref<1x128xf32, #tpu.memory_space<vmem>>, vector<1x128xf32>
    %c0_1 = arith.constant 0 : index
    %c0_2 = arith.constant 0 : index
    %c0_3 = arith.constant 0 : index
    %1 = vector.load %arg2[%c0_1, %c0_2, %c0_3] : memref<9x1x128xf32, #tpu.memory_space<vmem>>, vector<1x1x128xf32>
    %2 = vector.shape_cast %1 : vector<1x1x128xf32> to vector<1x128xf32>
    %3 = vector.shape_cast %0 : vector<1x128xf32> to vector<1x1x128xf32>
    tpu.vector_store %arg2[%c0_1, %c0_2, %c0_3], %3 {strides = array<i32>} : memref<9x1x128xf32, #tpu.memory_space<vmem>>, vector<1x1x128xf32>,
    %cst = arith.constant 1.000000e+00 : f32
    %4 = vector.broadcast %cst : f32 to vector<1x128xf32>
    %5 = arith.mulf %0, %4 : vector<1x128xf32>
    %6 = math.sin %5 : vector<1x128xf32>
    %c1 = arith.constant 1 : index
    %c0_4 = arith.constant 0 : index
    %c0_5 = arith.constant 0 : index
    %7 = vector.load %arg2[%c1, %c0_4, %c0_5] : memref<9x1x128xf32, #tpu.memory_space<vmem>>, vector<1x1x128xf32>
    %8 = vector.shape_cast %7 : vector<1x1x128xf32> to vector<1x128xf32>
    %9 = vector.shape_cast %6 : vector<1x128xf32> to vector<1x1x128xf32>
    tpu.vector_store %arg2[%c1, %c0_4, %c0_5], %9 {strides = array<i32>} : memref<9x1x128xf32, #tpu.memory_space<vmem>>, vector<1x1x128xf32>,
    %10 = math.cos %5 : vector<1x128xf32>
    %c2 = arith.constant 2 : index
    %c0_6 = arith.constant 0 : index
    %c0_7 = arith.constant 0 : index
    %11 = vector.load %arg2[%c2, %c0_6, %c0_7] : memref<9x1x128xf32, #tpu.memory_space<vmem>>, vector<1x1x128xf32>
    %12 = vector.shape_cast %11 : vector<1x1x128xf32> to vector<1x128xf32>
    %13 = vector.shape_cast %10 : vector<1x128xf32> to vector<1x1x128xf32>
    tpu.vector_store %arg2[%c2, %c0_6, %c0_7], %13 {strides = array<i32>} : memref<9x1x128xf32, #tpu.memory_space<vmem>>, vector<1x1x128xf32>,
    %cst_8 = arith.constant 3.33333325 : f32
    %14 = vector.broadcast %cst_8 : f32 to vector<1x128xf32>
    %15 = arith.mulf %0, %14 : vector<1x128xf32>
    %16 = math.sin %15 : vector<1x128xf32>
    %c3 = arith.constant 3 : index
    %c0_9 = arith.constant 0 : index
    %c0_10 = arith.constant 0 : index
    %17 = vector.load %arg2[%c3, %c0_9, %c0_10] : memref<9x1x128xf32, #tpu.memory_space<vmem>>, vector<1x1x128xf32>
    %18 = vector.shape_cast %17 : vector<1x1x128xf32> to vector<1x128xf32>
    %19 = vector.shape_cast %16 : vector<1x128xf32> to vector<1x1x128xf32>
    tpu.vector_store %arg2[%c3, %c0_9, %c0_10], %19 {strides = array<i32>} : memref<9x1x128xf32, #tpu.memory_space<vmem>>, vector<1x1x128xf32>,
    %20 = math.cos %15 : vector<1x128xf32>
    %c4 = arith.constant 4 : index
    %c0_11 = arith.constant 0 : index
    %c0_12 = arith.constant 0 : index
    %21 = vector.load %arg2[%c4, %c0_11, %c0_12] : memref<9x1x128xf32, #tpu.memory_space<vmem>>, vector<1x1x128xf32>
    %22 = vector.shape_cast %21 : vector<1x1x128xf32> to vector<1x128xf32>
    %23 = vector.shape_cast %20 : vector<1x128xf32> to vector<1x1x128xf32>
    tpu.vector_store %arg2[%c4, %c0_11, %c0_12], %23 {strides = array<i32>} : memref<9x1x128xf32, #tpu.memory_space<vmem>>, vector<1x1x128xf32>,
    %cst_13 = arith.constant 5.66666651 : f32
    %24 = vector.broadcast %cst_13 : f32 to vector<1x128xf32>
    %25 = arith.mulf %0, %24 : vector<1x128xf32>
    %26 = math.sin %25 : vector<1x128xf32>
    %c5 = arith.constant 5 : index
    %c0_14 = arith.constant 0 : index
    %c0_15 = arith.constant 0 : index
    %27 = vector.load %arg2[%c5, %c0_14, %c0_15] : memref<9x1x128xf32, #tpu.memory_space<vmem>>, vector<1x1x128xf32>
    %28 = vector.shape_cast %27 : vector<1x1x128xf32> to vector<1x128xf32>
    %29 = vector.shape_cast %26 : vector<1x128xf32> to vector<1x1x128xf32>
    tpu.vector_store %arg2[%c5, %c0_14, %c0_15], %29 {strides = array<i32>} : memref<9x1x128xf32, #tpu.memory_space<vmem>>, vector<1x1x128xf32>,
    %30 = math.cos %25 : vector<1x128xf32>
    %c6 = arith.constant 6 : index
    %c0_16 = arith.constant 0 : index
    %c0_17 = arith.constant 0 : index
    %31 = vector.load %arg2[%c6, %c0_16, %c0_17] : memref<9x1x128xf32, #tpu.memory_space<vmem>>, vector<1x1x128xf32>
    %32 = vector.shape_cast %31 : vector<1x1x128xf32> to vector<1x128xf32>
    %33 = vector.shape_cast %30 : vector<1x128xf32> to vector<1x1x128xf32>
    tpu.vector_store %arg2[%c6, %c0_16, %c0_17], %33 {strides = array<i32>} : memref<9x1x128xf32, #tpu.memory_space<vmem>>, vector<1x1x128xf32>,
    %cst_18 = arith.constant 8.000000e+00 : f32
    %34 = vector.broadcast %cst_18 : f32 to vector<1x128xf32>
    %35 = arith.mulf %0, %34 : vector<1x128xf32>
    %36 = math.sin %35 : vector<1x128xf32>
    %c7 = arith.constant 7 : index
    %c0_19 = arith.constant 0 : index
    %c0_20 = arith.constant 0 : index
    %37 = vector.load %arg2[%c7, %c0_19, %c0_20] : memref<9x1x128xf32, #tpu.memory_space<vmem>>, vector<1x1x128xf32>
    %38 = vector.shape_cast %37 : vector<1x1x128xf32> to vector<1x128xf32>
    %39 = vector.shape_cast %36 : vector<1x128xf32> to vector<1x1x128xf32>
    tpu.vector_store %arg2[%c7, %c0_19, %c0_20], %39 {strides = array<i32>} : memref<9x1x128xf32, #tpu.memory_space<vmem>>, vector<1x1x128xf32>,
    %40 = math.cos %35 : vector<1x128xf32>
    %c8 = arith.constant 8 : index
    %c0_21 = arith.constant 0 : index
    %c0_22 = arith.constant 0 : index
    %41 = vector.load %arg2[%c8, %c0_21, %c0_22] : memref<9x1x128xf32, #tpu.memory_space<vmem>>, vector<1x1x128xf32>
    %42 = vector.shape_cast %41 : vector<1x1x128xf32> to vector<1x128xf32>
    %43 = vector.shape_cast %40 : vector<1x128xf32> to vector<1x1x128xf32>
    tpu.vector_store %arg2[%c8, %c0_21, %c0_22], %43 {strides = array<i32>} : memref<9x1x128xf32, #tpu.memory_space<vmem>>, vector<1x1x128xf32>,
    return
  }
  func.func @transform_0(%arg0: i32) -> (i32, i32) {
    %c0_i32 = arith.constant 0 : i32
    %c0_i32_0 = arith.constant 0 : i32
    return %arg0, %c0_i32 : i32, i32
  }
  func.func @transform_1(%arg0: i32) -> (i32, i32, i32) {
    %c0_i32 = arith.constant 0 : i32
    %c0_i32_0 = arith.constant 0 : i32
    %c0_i32_1 = arith.constant 0 : i32
    return %c0_i32, %arg0, %c0_i32_0 : i32, i32, i32
  }
}

</mosaic_0001>

<bundles_post_ra>
// kernel: tpu_custom_call.1
= control target key start
LH: loop header
LB: loop body
LE: loop exit
PB: predicated region body
PF: predicated region fallthrough
CT: control target
= control target key end

     0   :  { %6 = vsyncpa [#allocation3], 0  ;;  %s1336_s0 = inlined_call_operand.hbm [shape: f32[1,128], index: 0, kind: input, shape index: {}]   ;;  %s1337_s1 = inlined_call_operand.hbm [shape: f32[9,1,128], index: 1, kind: output, shape index: {}]  }
   0x1   :  { %7 = vsyncpa [#allocation4], 0  ;;  %s1005_s6 = smov [#allocation2]  }
   0x2   :  { %s14_s7 = sshll.u32 %s1005_s6, 4  ;;  %s15_s7 = int_to_ptr.vmem [resolvable:$true] %s14_s7 }
   0x3   :  { %s969_s8 = scalar_lea.vmem %s15_s7, 16  ;;  %s973_s9 = scalar_lea.vmem %s15_s7, 32 }
   0x4   :  { %p970_p0 = scmp.ne.s32.totalorder %s15_s7, %s969_s8  ;;  %p974_p1 = scmp.lt.s32.totalorder %s15_s7, %s15_s7 }
   0x5   :  { %p975_p2 = scmp.lt.s32.totalorder %s973_s9, %s969_s8 }
   0x7   :  { %p976_p3 = por %p975_p2, %p974_p1 }
   0x9   :  { %p977_p4 = pnand %p976_p3, %p970_p0 }
   0xb   :  { %980 = shalt.err (!%p977_p4)
}
   0xc   :  { %17 = dma.hbm_to_vmem [thread:$0]  %s1336_s0, 16, %s15_s7, [#allocation3]  }
   0xd   :  { %1001 = dma.done.wait [#allocation3], 16  }
   0xe   :  { %1002 = vsyncadd [#allocation3], 4294967280  ;;  %v1028_v0 = vld [vmem:[#allocation2] sm:$0x1]  ;;  %v1006_v26 = vmov 683565275  }
   0xf   :  { %22 = vst [vmem:[#allocation5] sm:$0x1] %v1028_v0  ;;  %v23_v1 = vand.u32 2147483647, %v1028_v0  ;;  %v26_v2 = vand.u32 2139095040, %v1028_v0  ;;  %vm25_vm13 = vcmp.lt.s32.totalorder %v1028_v0, 0 }
  0x10   :  { %v1034_v3 = vmul.f32 3.3333333, %v1028_v0  ;;  %v1037_v4 = vmul.f32 5.6666665, %v1028_v0  ;;  %v1007_v28 = vmov 2475754826  }
  0x11   :  { %v27_v5 = vshrl.u32 %v26_v2, 23  ;;  %v30_v6 = vand.u32 8388607, %v23_v1  ;;  %v1008_v30 = vmov 2131351028   ;;  %s1012_s0 = smov [#allocation5]  }
  0x12   :  { %v235_v7 = vand.u32 2147483647, %v1034_v3  ;;  %v238_v8 = vand.u32 2139095040, %v1034_v3  ;;  %v450_v12 = vand.u32 2139095040, %v1037_v4  ;;  %v1009_v32 = vmov 2102212464  }
  0x13   :  { %v887_v9 = vadd.s32 4294967169, %v27_v5  ;;  %v31_v14 = vor.u32 8388608, %v30_v6  ;;  %v1010_v34 = vmov 920167782   ;;  %v1011_v41 = vmov 1326507024  }
  0x14   :  { %v239_v10 = vshrl.u32 %v238_v8, 23  ;;  %v242_v11 = vand.u32 8388607, %v235_v7  ;;  %v451_v17 = vshrl.u32 %v450_v12, 23  ;;  %vm1146_vm14 = vcmp.le.f32.partialorder %v23_v1, 0.7853982 }
  0x15   :  { %v33_v13 = vadd.s32 1, %v887_v9  ;;  %v1046_v22 = vshll.u32 %v31_v14, 8  ;;  %s875_s12 = sshll.u32 %s1012_s0, 4  ;;  %s876_s12 = int_to_ptr.vmem [resolvable:$true] %s875_s12 }
  0x16   :  { %v895_v15 = vadd.s32 4294967169, %v239_v10  ;;  %v243_v16 = vor.u32 8388608, %v242_v11  ;;  %v1050_v24 = vadd.s32 4294967169, %v451_v17  ;;  %s981_s13 = scalar_lea.vmem %s876_s12, 144  ;;  %s985_s14 = scalar_lea.vmem %s876_s12, 160 }
  0x17   :  { %vm34_vm0 = vcmp.gt.s32.totalorder %v33_v13, 0  ;;  %p982_p5 = scmp.ne.s32.totalorder %s876_s12, %s981_s13  ;;  %p986_p6 = scmp.lt.s32.totalorder %s876_s12, %s876_s12 }
  0x18   :  { %v35_v18 = vsel %vm34_vm0, %v33_v13, 0  ;;  %v245_v19 = vadd.s32 1, %v895_v15  ;;  %v1048_v23 = vshll.u32 %v243_v16, 8  ;;  %p987_p7 = scmp.lt.s32.totalorder %s985_s14, %s981_s13 }
  0x19   :  { %v36_v20 = vshrl.u32 %v35_v18, 5  ;;  %v37_v21 = vand.u32 31, %v35_v18 }
  0x1a   :  { %vm246_vm1 = vcmp.gt.s32.totalorder %v245_v19, 0  ;;  %p988_p8 = por %p987_p7, %p986_p6 }
  0x1b   :  { %v38_v25 = vsub.s32 32, %v37_v21  ;;  %v40_v27 = vshll.u32 %v1006_v26, %v37_v21  ;;  %v43_v29 = vshll.u32 %v1007_v28, %v37_v21  ;;  %v46_v31 = vshll.u32 %v1008_v30, %v37_v21 }
  0x1c   :  { %v49_v33 = vshll.u32 %v1009_v32, %v37_v21  ;;  %v52_v35 = vshll.u32 %v1010_v34, %v37_v21  ;;  %vm55_vm2 = vcmp.lt.s32.totalorder %v36_v20, 1  ;;  %vm56_vm3 = vcmp.lt.s32.totalorder %v36_v20, 2  ;;  %p989_p9 = pnand %p988_p8, %p982_p5 }
  0x1d   :  { %v39_v36 = vshrl.u32 %v1006_v26, %v38_v25  ;;  %v41_v37 = vshrl.u32 %v1007_v28, %v38_v25  ;;  %v44_v38 = vshrl.u32 %v1008_v30, %v38_v25  ;;  %v47_v39 = vshrl.u32 %v1009_v32, %v38_v25 }
  0x1e   :  { %v50_v40 = vshrl.u32 %v1010_v34, %v38_v25  ;;  %v53_v42 = vshrl.u32 %v1011_v41, %v38_v25  ;;  %vm57_vm4 = vcmp.lt.s32.totalorder %v36_v20, 3  ;;  %vm58_vm5 = vcmp.lt.s32.totalorder %v36_v20, 4 }
  0x1f   :  { %v42_v43 = vor.u32 %v41_v37, %v40_v27  ;;  %v45_v44 = vor.u32 %v44_v38, %v43_v29  ;;  %v48_v45 = vor.u32 %v47_v39, %v46_v31  ;;  %v247_v46 = vsel %vm246_vm1, %v245_v19, 0 }
  0x20   :  { %v51_v47 = vor.u32 %v50_v40, %v49_v33  ;;  %v54_v48 = vor.u32 %v53_v42, %v52_v35  ;;  %v248_v49 = vshrl.u32 %v247_v46, 5  ;;  %v249_v50 = vand.u32 31, %v247_v46 }
  0x21   :  { %v59_v51 = vsel %vm55_vm2, %v39_v36, %v42_v43  ;;  %v60_v52 = vsel %vm58_vm5, %v48_v45, 2102212464  ;;  %v63_v53 = vsel %vm55_vm2, %v42_v43, %v45_v44  ;;  %v67_v54 = vsel %vm55_vm2, %v45_v44, %v48_v45 }
  0x22   :  { %v61_v55 = vsel %vm57_vm4, %v45_v44, %v60_v52  ;;  %v64_v56 = vsel %vm58_vm5, %v51_v47, 920167782  ;;  %v68_v57 = vsel %vm58_vm5, %v54_v48, 1326507024  ;;  %v250_v58 = vsub.s32 32, %v249_v50 }
  0x23   :  { %v62_v59 = vsel %vm56_vm3, %v59_v51, %v61_v55  ;;  %v65_v60 = vsel %vm57_vm4, %v48_v45, %v64_v56  ;;  %v69_v61 = vsel %vm57_vm4, %v51_v47, %v68_v57  ;;  %v252_v62 = vshll.u32 %v1006_v26, %v249_v50 }
  0x24   :  { %v66_v63 = vsel %vm56_vm3, %v63_v53, %v65_v60  ;;  %v70_v2 = vsel %vm56_vm3, %v67_v54, %v69_v61  ;;  %v78_v5 = vmul.u32 %v1046_v22, %v62_v59  ;;  %v251_v6 = vshrl.u32 %v1006_v26, %v250_v58 }
  0x25   :  { %v1077_v8 = vmul.u32.u64.low %v1046_v22, %v70_v2  ;;  %v1078_v9 = vmul.u32.u64.high %v1046_v22, %v70_v2, %v1077_v8  ;;  %v1081_v10 = vmul.u32.u64.low %v1046_v22, %v66_v63  ;;  %v1082_v11 = vmul.u32.u64.high %v1046_v22, %v66_v63, %v1081_v10 }
  0x26   :  { %v253_v12 = vshrl.u32 %v1007_v28, %v250_v58  ;;  %v255_v13 = vshll.u32 %v1007_v28, %v249_v50  ;;  %v256_v14 = vshrl.u32 %v1008_v30, %v250_v58  ;;  %v258_v15 = vshll.u32 %v1008_v30, %v249_v50 }
  0x27   :  { %v259_v16 = vshrl.u32 %v1009_v32, %v250_v58  ;;  %v261_v17 = vshll.u32 %v1009_v32, %v249_v50  ;;  %v262_v18 = vshrl.u32 %v1010_v34, %v250_v58  ;;  %v264_v19 = vshll.u32 %v1010_v34, %v249_v50 }
  0x28   :  { %v254_v20 = vor.u32 %v253_v12, %v252_v62  ;;  %v257_v21 = vor.u32 %v256_v14, %v255_v13  ;;  %v265_v22 = vshrl.u32 %v1011_v41, %v250_v58  ;;  %vm267_vm6 = vcmp.lt.s32.totalorder %v248_v49, 1 }
  0x29   :  { %vm80_vm7 = vc.u32 %v1078_v9, %v1081_v10  ;;  %v81_v25 = vadd.s32 1, %v1082_v11  ;;  %v260_v27 = vor.u32 %v259_v16, %v258_v15  ;;  %v457_v29 = vadd.s32 1, %v1050_v24 }
  0x2a   :  { %v263_v31 = vor.u32 %v262_v18, %v261_v17  ;;  %v266_v33 = vor.u32 %v265_v22, %v264_v19  ;;  %vm268_vm8 = vcmp.lt.s32.totalorder %v248_v49, 2  ;;  %vm269_vm9 = vcmp.lt.s32.totalorder %v248_v49, 3 }
  0x2b   :  { %v82_v35 = vsel %vm80_vm7, %v81_v25, %v1082_v11  ;;  %vm270_vm10 = vcmp.lt.s32.totalorder %v248_v49, 4  ;;  %v271_v36 = vsel %vm267_vm6, %v251_v6, %v254_v20  ;;  %v275_v37 = vsel %vm267_vm6, %v254_v20, %v257_v21 }
  0x2c   :  { %v83_v38 = vadd.s32 %v82_v35, %v78_v5  ;;  %v272_v39 = vsel %vm270_vm10, %v260_v27, 2102212464  ;;  %v276_v40 = vsel %vm270_vm10, %v263_v31, 920167782  ;;  %v279_v42 = vsel %vm267_vm6, %v257_v21, %v260_v27 }
  0x2d   :  { %v273_v43 = vsel %vm269_vm9, %v257_v21, %v272_v39  ;;  %v277_v44 = vsel %vm269_vm9, %v260_v27, %v276_v40  ;;  %v280_v45 = vsel %vm270_vm10, %v266_v33, 1326507024  ;;  %vm458_vm11 = vcmp.gt.s32.totalorder %v457_v29, 0 }
  0x2e   :  { %v84_v24 = vadd.s32 536870912, %v83_v38  ;;  %v278_v46 = vsel %vm268_vm8, %v275_v37, %v277_v44  ;;  %v281_v47 = vsel %vm269_vm9, %v263_v31, %v280_v45  ;;  %v447_v48 = vand.u32 2147483647, %v1037_v4 }
  0x2f   :  { %v274_v50 = vsel %vm268_vm8, %v271_v36, %v273_v43  ;;  %v282_v51 = vsel %vm268_vm8, %v279_v42, %v281_v47  ;;  %v1107_v52 = vmul.u32.u64.low %v1048_v23, %v278_v46  ;;  %v1108_v53 = vmul.u32.u64.high %v1048_v23, %v278_v46, %v1107_v52 }
  0x30   :  { %v85_v54 = vshrl.u32 %v84_v24, 30  ;;  %v1112_v55 = vmul.u32.u64.low %v1048_v23, %v282_v51  ;;  %v1113_v56 = vmul.u32.u64.high %v1048_v23, %v282_v51, %v1112_v55  ;;  %v459_v57 = vsel %vm458_vm11, %v457_v29, 0 }
  0x31   :  { %v461_v58 = vand.u32 31, %v459_v57  ;;  %v290_v60 = vmul.u32 %v1048_v23, %v274_v50  ;;  %v1117_v61 = vmul.f32 8.0, %v1028_v0  ;;  %v293_v49 = vadd.s32 1, %v1108_v53 }
  0x32   :  { %v86_v59 = vshll.u32 %v85_v54, 30  ;;  %v454_v62 = vand.u32 8388607, %v447_v48  ;;  %vm292_vm12 = vc.u32 %v1113_v56, %v1107_v52  ;;  %v109_v13 = vsub.s32 4, %v85_v54 }
  0x33   :  { %v659_v2 = vand.u32 2147483647, %v1117_v61  ;;  %v294_v5 = vsel %vm292_vm12, %v293_v49, %v1108_v53  ;;  %v462_v6 = vsub.s32 32, %v461_v58  ;;  %v662_v14 = vand.u32 2139095040, %v1117_v61 }
  0x34   :  { %v87_v63 = vsub.s32 %v83_v38, %v86_v59  ;;  %v295_v11 = vadd.s32 %v294_v5, %v290_v60  ;;  %v455_v23 = vor.u32 8388608, %v454_v62  ;;  %v464_v17 = vshll.u32 %v1006_v26, %v461_v58 }
  0x35   :  { %v1129_v15 = vand.u32 8388607, %v659_v2  ;;  %v465_v18 = vshrl.u32 %v1007_v28, %v462_v6  ;;  %v467_v19 = vshll.u32 %v1007_v28, %v461_v58  ;;  %v468_v21 = vshrl.u32 %v1008_v30, %v462_v6 }
  0x36   :  { %v89_v8 = vsub.s32 0, %v87_v63  ;;  %v296_v16 = vadd.s32 536870912, %v295_v11  ;;  %v470_v22 = vshll.u32 %v1008_v30, %v461_v58  ;;  %v471_v25 = vshrl.u32 %v1009_v32, %v462_v6 }
  0x37   :  { %v79_v27 = vadd.s32 %v1081_v10, %v1078_v9  ;;  %v1142_v31 = vshll.u32 %v455_v23, 8  ;;  %v460_v36 = vshrl.u32 %v459_v57, 5  ;;  %v473_v37 = vshll.u32 %v1009_v32, %v461_v58 }
  0x38   :  { %v888_v12 = vmin.u32 %v89_v8, %v87_v63  ;;  %v1140_v29 = vshrl.u32 %v296_v16, 30  ;;  %v474_v38 = vshrl.u32 %v1010_v34, %v462_v6  ;;  %v110_v39 = vsel %vm25_vm13, %v109_v13, %v85_v54 }
  0x39   :  { %v663_v10 = vshrl.u32 %v662_v14, 23  ;;  %v667_v40 = vor.u32 8388608, %v1129_v15  ;;  %v466_v42 = vor.u32 %v465_v18, %v464_v17  ;;  %v469_v1 = vor.u32 %v468_v21, %v467_v19 }
  0x3a   :  { %v91_v20 = vclz %v888_v12  ;;  %v298_v9 = vshll.u32 %v1140_v29, 30  ;;  %v472_v43 = vor.u32 %v471_v25, %v470_v22  ;;  %v476_v24 = vshll.u32 %v1010_v34, %v461_v58 }
  0x3b   :  { %v477_v46 = vshrl.u32 %v1011_v41, %v462_v6  ;;  %v475_v53 = vor.u32 %v474_v38, %v473_v37  ;;  %v463_v55 = vshrl.u32 %v1006_v26, %v462_v6  ;;  %vm479_vm0 = vcmp.lt.s32.totalorder %v460_v36, 1 }
  0x3c   :  { %v889_v35 = vadd.s32 4294967294, %v91_v20  ;;  %v1156_v45 = vsub.s32 %v295_v11, %v298_v9  ;;  %vm482_vm1 = vcmp.lt.s32.totalorder %v460_v36, 4  ;;  %v291_v60 = vadd.s32 %v1107_v52, %v1113_v56 }
  0x3d   :  { %v484_v49 = vsel %vm482_vm1, %v472_v43, 2102212464  ;;  %v478_v62 = vor.u32 %v477_v46, %v476_v24  ;;  %vm480_vm2 = vcmp.lt.s32.totalorder %v460_v36, 2  ;;  %vm481_vm3 = vcmp.lt.s32.totalorder %v460_v36, 3 }
  0x3e   :  { %vm890_vm15 = vcmp.lt.s32.totalorder %v889_v35, 0  ;;  %v301_v54 = vsub.s32 0, %v1156_v45  ;;  %v487_v8 = vsel %vm479_vm0, %v466_v42, %v469_v1  ;;  %v488_v6 = vsel %vm482_vm1, %v475_v53, 920167782 }
  0x3f   :  { %v94_v44 = vsel %vm890_vm15, 0, %v889_v35  ;;  %v112_v11 = vsel %vm1146_vm14, 0, %v110_v39  ;;  %vm237_vm4 = vcmp.lt.s32.totalorder %v1034_v3, 0  ;;  %v483_v52 = vsel %vm479_vm0, %v463_v55, %v466_v42 }
  0x40   :  { %v95_v47 = vsub.s32 32, %v94_v44  ;;  %v96_v50 = vshll.u32 %v87_v63, %v94_v44  ;;  %v99_v51 = vsub.s32 4294967266, %v94_v44  ;;  %v896_v58 = vmin.u32 %v301_v54, %v1156_v45 }
  0x41   :  { %v485_v56 = vsel %vm481_vm3, %v469_v1, %v484_v49  ;;  %v489_v14 = vsel %vm481_vm3, %v472_v43, %v488_v6  ;;  %v491_v16 = vsel %vm479_vm0, %v469_v1, %v472_v43  ;;  %v321_v18 = vsub.s32 4, %v1140_v29 }
  0x42   :  { %v97_v57 = vshrl.u32 %v79_v27, %v95_v47  ;;  %v100_v59 = vadd.s32 127, %v99_v51  ;;  %v303_v23 = vclz %v896_v58  ;;  %v490_v19 = vsel %vm480_vm2, %v487_v8, %v489_v14 }
  0x43   :  { %v492_v20 = vsel %vm482_vm1, %v478_v62, 1326507024  ;;  %vm1180_vm5 = vcmp.le.f32.partialorder %v235_v7, 0.7853982  ;;  %v1186_v27 = vmul.u32.u64.low %v1142_v31, %v490_v19  ;;  %v1187_v35 = vmul.u32.u64.high %v1142_v31, %v490_v19, %v1186_v27 }
  0x44   :  { %v98_v63 = vor.u32 %v97_v57, %v96_v50  ;;  %v101_v5 = vshll.u32 %v100_v59, 23  ;;  %v897_v17 = vadd.s32 4294967294, %v303_v23  ;;  %v493_v25 = vsel %vm481_vm3, %v475_v53, %v492_v20 }
  0x45   :  { %v486_v37 = vsel %vm480_vm2, %v483_v52, %v485_v56  ;;  %v494_v38 = vsel %vm480_vm2, %v491_v16, %v493_v25  ;;  %v911_v39 = vadd.s32 4294967169, %v663_v10  ;;  %v116_v50 = vadd.s32 3, %v112_v11 }
  0x46   :  { %v102_v12 = vor.u32 4788187, %v101_v5  ;;  %v105_v13 = vcvt.s32.f32 %v98_v63  ;;  %vm898_vm6 = vcmp.lt.s32.totalorder %v897_v17, 0  ;;  %v502_v51 = vmul.u32 %v1142_v31, %v486_v37 }
  0x47   :  { %v306_v42 = vsel %vm898_vm6, 0, %v897_v17  ;;  %v1193_v7 = vmul.u32.u64.low %v1142_v31, %v494_v38  ;;  %v1194_v1 = vmul.u32.u64.high %v1142_v31, %v494_v38, %v1193_v7  ;;  %v669_v46 = vadd.s32 1, %v911_v39 }
  0x48   :  { %v103_v21 = vand.u32 2147483647, %v102_v12  ;;  %v307_v43 = vsub.s32 32, %v306_v42  ;;  %v308_v44 = vshll.u32 %v1156_v45, %v306_v42  ;;  %v311_v24 = vsub.s32 4294967266, %v306_v42 }
  0x49   :  { %v505_v53 = vadd.s32 1, %v1187_v35  ;;  %v1199_v36 = vand.u32 3, %v112_v11  ;;  %vm670_vm7 = vcmp.gt.s32.totalorder %v669_v46, 0  ;;  %v322_v45 = vsel %vm237_vm4, %v321_v18, %v1140_v29 }
  0x4a   :  { %v106_v9 = vmul.f32 %v105_v13, %v103_v21  ;;  %v309_v10 = vshrl.u32 %v291_v60, %v307_v43  ;;  %v312_v54 = vadd.s32 127, %v311_v24  ;;  %vm504_vm8 = vc.u32 %v1194_v1, %v1186_v27 }
  0x4b   :  { %v671_v57 = vsel %vm670_vm7, %v669_v46, 0  ;;  %v506_v60 = vsel %vm504_vm8, %v505_v53, %v1187_v35  ;;  %v1212_v58 = vand.u32 3, %v116_v50  ;;  %v324_v8 = vsel %vm1180_vm5, 0, %v322_v45 }
  0x4c   :  { %v107_v47 = vxor.u32 2147483648, %v106_v9  ;;  %v310_v59 = vor.u32 %v309_v10, %v308_v44  ;;  %v313_v49 = vshll.u32 %v312_v54, 23  ;;  %v507_v62 = vadd.s32 %v506_v60, %v502_v51 }
  0x4d   :  { %v673_v63 = vand.u32 31, %v671_v57  ;;  %v1223_v16 = vshrl.u32 %v671_v57, 5  ;;  %vm115_vm9 = vweird.f32 %v1028_v0  ;;  %vm223_vm10 = vcmp.lt.s32.totalorder %v1199_v36, 2 }
  0x4e   :  { %v108_v55 = vsel %vm25_vm13, %v107_v47, %v106_v9  ;;  %v314_v5 = vor.u32 4788187, %v313_v49  ;;  %v317_v29 = vcvt.s32.f32 %v310_v59  ;;  %v508_v6 = vadd.s32 536870912, %v507_v62 }
  0x4f   :  { %v111_v31 = vsel %vm1146_vm14, %v1028_v0, %v108_v55  ;;  %v674_v11 = vsub.s32 32, %v673_v63  ;;  %v676_v33 = vshll.u32 %v1006_v26, %v673_v63  ;;  %v679_v23 = vshll.u32 %v1007_v28, %v673_v63 }
  0x50   :  { %945 = vcosq.f32 %v111_v31  ;;  %v315_v52 = vand.u32 2147483647, %v314_v5  ;;  %v682_v56 = vshll.u32 %v1008_v30, %v673_v63  ;;  %v685_v12 = vshll.u32 %v1009_v32, %v673_v63 }
  0x51   :  { %947 = vsinq.f32 %v111_v31  ;;  %v688_v13 = vshll.u32 %v1010_v34, %v673_v63  ;;  %v1221_v14 = vshrl.u32 %v508_v6, 30  ;;  %v677_v17 = vshrl.u32 %v1007_v28, %v674_v11 }
  0x52   :  { %v680_v18 = vshrl.u32 %v1008_v30, %v674_v11  ;;  %v318_v19 = vmul.f32 %v317_v29, %v315_v52  ;;  %v683_v20 = vshrl.u32 %v1009_v32, %v674_v11  ;;  %v686_v21 = vshrl.u32 %v1010_v34, %v674_v11 }
  0x53   :  { %v689_v25 = vshrl.u32 %v1011_v41, %v674_v11  ;;  %v510_v35 = vshll.u32 %v1221_v14, 30  ;;  %v675_v37 = vshrl.u32 %v1006_v26, %v674_v11  ;;  %v678_v38 = vor.u32 %v677_v17, %v676_v33 }
  0x54   :  { %v681_v39 = vor.u32 %v680_v18, %v679_v23  ;;  %v319_v9 = vxor.u32 2147483648, %v318_v19  ;;  %v684_v42 = vor.u32 %v683_v20, %v682_v56  ;;  %v687_v7 = vor.u32 %v686_v21, %v685_v12 }
  0x55   :  { %v690_v43 = vor.u32 %v689_v25, %v688_v13  ;;  %vm224_vm11 = vcmp.eq.s32.totalorder %v1199_v36, 0  ;;  %v1235_v28 = vsub.s32 %v507_v62, %v510_v35  ;;  %vm691_vm12 = vcmp.lt.s32.totalorder %v1223_v16, 1 }
  0x56   :  { %vm118_vm13 = vcmp.lt.s32.totalorder %v1212_v58, 2  ;;  %vm119_vm14 = vcmp.eq.s32.totalorder %v1212_v58, 0  ;;  %vm227_vm15 = vcmp.eq.s32.totalorder %v1199_v36, 2  ;;  %v320_v26 = vsel %vm237_vm4, %v319_v9, %v318_v19 }
  0x57   :  { %v323_v30 = vsel %vm1180_vm5, %v1034_v3, %v320_v26  ;;  %v328_v32 = vadd.s32 3, %v324_v8  ;;  %v513_v34 = vsub.s32 0, %v1235_v28  ;;  %vm694_vm0 = vcmp.lt.s32.totalorder %v1223_v16, 4 }
  0x58   :  { %949 = vcosq.f32 %v323_v30  ;;  %v695_v41 = vsel %vm691_vm12, %v675_v37, %v678_v38  ;;  %v696_v44 = vsel %vm694_vm0, %v684_v42, 2102212464  ;;  %v699_v24 = vsel %vm691_vm12, %v678_v38, %v681_v39 }
  0x59   :  { %vm122_vm1 = vcmp.eq.s32.totalorder %v1212_v58, 2  ;;  %951 = vsinq.f32 %v323_v30  ;;  %v904_v22 = vmin.u32 %v513_v34, %v1235_v28  ;;  %vm693_vm2 = vcmp.lt.s32.totalorder %v1223_v16, 3 }
  0x5a   :  { %v1257_v47 = vand.u32 3, %v324_v8  ;;  %vm692_vm3 = vcmp.lt.s32.totalorder %v1223_v16, 2  ;;  %v697_v50 = vsel %vm693_vm2, %v681_v39, %v696_v44  ;;  %v700_v51 = vsel %vm694_vm0, %v687_v7, 920167782 }
  0x5b   :  { %v329_v54 = vand.u32 3, %v328_v32  ;;  %v515_v55 = vclz %v904_v22  ;;  %v707_v45 = vshll.u32 %v667_v40, 8  ;;  %v503_v31 = vadd.s32 %v1186_v27, %v1194_v1 }
  0x5c   :  { %v698_v59 = vsel %vm692_vm3, %v695_v41, %v697_v50  ;;  %v701_v49 = vsel %vm693_vm2, %v684_v42, %v700_v51  ;;  %v703_v1 = vsel %vm691_vm12, %v681_v39, %v684_v42  ;;  %v704_v5 = vsel %vm694_vm0, %v690_v43, 1326507024 }
  0x5d   :  { %v946_v46 = vpop.eup %945  ;;  %v905_v63 = vadd.s32 4294967294, %v515_v55  ;;  %v702_v15 = vsel %vm692_vm3, %v699_v24, %v701_v49  ;;  %v705_v6 = vsel %vm693_vm2, %v687_v7, %v704_v5  ;;  %vm331_vm5 = vcmp.eq.s32.totalorder %v329_v54, 0 }
  0x5e   :  { %v948_v53 = vpop.eup %947  ;;  %v123_v10 = vxor.u32 2147483648, %v946_v46  ;;  %v706_v52 = vsel %vm692_vm3, %v703_v1, %v705_v6  ;;  %v1302_v17 = vmul.u32.u64.low %v707_v45, %v702_v15  ;;  %v1303_v18 = vmul.u32.u64.high %v707_v45, %v702_v15, %v1302_v17 }
  0x5f   :  { %v120_v57 = vxor.u32 2147483648, %v948_v53  ;;  %vm906_vm4 = vcmp.lt.s32.totalorder %v905_v63, 0  ;;  %v1299_v12 = vmul.u32.u64.low %v707_v45, %v706_v52  ;;  %v1300_v13 = vmul.u32.u64.high %v707_v45, %v706_v52, %v1299_v12 }
  0x60   :  { %v124_v60 = vsel %vm122_vm1, %v123_v10, %v948_v53  ;;  %v229_v62 = vsel %vm227_vm15, %v123_v10, %v948_v53  ;;  %v518_v23 = vsel %vm906_vm4, 0, %v905_v63  ;;  %vm435_vm6 = vcmp.lt.s32.totalorder %v1257_v47, 2 }
  0x61   :  { %v121_v40 = vsel %vm119_vm14, %v946_v46, %v120_v57  ;;  %v226_v27 = vsel %vm224_vm11, %v946_v46, %v120_v57  ;;  %v519_v58 = vsub.s32 32, %v518_v23  ;;  %v520_v36 = vshll.u32 %v1235_v28, %v518_v23 }
  0x62   :  { %v125_v29 = vsel %vm118_vm13, %v121_v40, %v124_v60  ;;  %v230_v8 = vsel %vm223_vm10, %v226_v27, %v229_v62  ;;  %v523_v56 = vsub.s32 4294967266, %v518_v23  ;;  %vm436_vm7 = vcmp.eq.s32.totalorder %v1257_v47, 0 }
  0x63   :  { %v126_v11 = vsel %vm115_vm9, nan, %v125_v29  ;;  %v231_v33 = vsel %vm115_vm9, nan, %v230_v8  ;;  %v521_v19 = vshrl.u32 %v503_v31, %v519_v58  ;;  %vm439_vm8 = vcmp.eq.s32.totalorder %v1257_v47, 2 }
  0x64   :  { %128 = vst [vmem:[#allocation5 + $0x1] sm:$0x1] %v126_v11  ;;  %233 = vst [vmem:[#allocation5 + $0x2] sm:$0x1] %v231_v33  ;;  %v524_v20 = vadd.s32 127, %v523_v56  ;;  %vm334_vm9 = vcmp.eq.s32.totalorder %v329_v54, 2  ;;  %v714_v25 = vmul.u32 %v707_v45, %v698_v59  ;;  %v715_v38 = vadd.s32 %v1302_v17, %v1300_v13 }
  0x65   :  { %v950_v0 = vpop.eup %949  ;;  %v522_v16 = vor.u32 %v521_v19, %v520_v36  ;;  %vm716_vm10 = vc.u32 %v1300_v13, %v1302_v17  ;;  %v717_v39 = vadd.s32 1, %v1303_v18  ;;  %vm330_vm11 = vcmp.lt.s32.totalorder %v329_v54, 2 }
  0x66   :  { %v525_v21 = vshll.u32 %v524_v20, 23  ;;  %v952_v35 = vpop.eup %951  ;;  %v335_v37 = vxor.u32 2147483648, %v950_v0  ;;  %vm327_vm12 = vweird.f32 %v1034_v3  ;;  %vm449_vm13 = vcmp.lt.s32.totalorder %v1037_v4, 0 }
  0x67   :  { %v332_v9 = vxor.u32 2147483648, %v952_v35  ;;  %v529_v7 = vcvt.s32.f32 %v522_v16  ;;  %v718_v26 = vsel %vm716_vm10, %v717_v39, %v1303_v18  ;;  %v533_v51 = vsub.s32 4, %v1221_v14 }
  0x68   :  { %v526_v42 = vor.u32 4788187, %v525_v21  ;;  %v336_v43 = vsel %vm334_vm9, %v335_v37, %v952_v35  ;;  %v441_v28 = vsel %vm439_vm8, %v335_v37, %v952_v35  ;;  %v719_v41 = vadd.s32 %v718_v26, %v714_v25 }
  0x69   :  { %v333_v30 = vsel %vm331_vm5, %v950_v0, %v332_v9  ;;  %v438_v32 = vsel %vm436_vm7, %v950_v0, %v332_v9  ;;  %vm448_vm14 = vcmp.le.f32.partialorder %v447_v48, 0.7853982  ;;  %v534_v47 = vsel %vm449_vm13, %v533_v51, %v1221_v14 }
  0x6a   :  { %v527_v34 = vand.u32 2147483647, %v526_v42  ;;  %v337_v44 = vsel %vm330_vm11, %v333_v30, %v336_v43  ;;  %v442_v24 = vsel %vm435_vm6, %v438_v32, %v441_v28  ;;  %v720_v50 = vadd.s32 536870912, %v719_v41 }
  0x6b   :  { %v338_v22 = vsel %vm327_vm12, nan, %v337_v44  ;;  %v443_v46 = vsel %vm327_vm12, nan, %v442_v24  ;;  %v536_v31 = vsel %vm448_vm14, 0, %v534_v47  ;;  %vm539_vm4 = vweird.f32 %v1037_v4 }
  0x6c   :  { %v530_v3 = vmul.f32 %v529_v7, %v527_v34  ;;  %340 = vst [vmem:[#allocation5 + $0x3] sm:$0x1] %v338_v22  ;;  %445 = vst [vmem:[#allocation5 + $0x4] sm:$0x1] %v443_v46  ;;  %v721_v10 = vshrl.u32 %v720_v50, 30  ;;  %v540_v60 = vadd.s32 3, %v536_v31 }
  0x6d   :  { %v646_v40 = vand.u32 3, %v536_v31  ;;  %vm661_vm7 = vcmp.lt.s32.totalorder %v1117_v61, 0  ;;  %vm660_vm8 = vcmp.le.f32.partialorder %v659_v2, 0.7853982 }
  0x6e   :  { %v531_v53 = vxor.u32 2147483648, %v530_v3  ;;  %v722_v55 = vshll.u32 %v721_v10, 30  ;;  %v541_v15 = vand.u32 3, %v540_v60  ;;  %v745_v21 = vsub.s32 4, %v721_v10 }
  0x6f   :  { %vm648_vm1 = vcmp.eq.s32.totalorder %v646_v40, 0  ;;  %vm651_vm2 = vcmp.eq.s32.totalorder %v646_v40, 2  ;;  %vm647_vm6 = vcmp.lt.s32.totalorder %v646_v40, 2 }
  0x70   :  { %v532_v54 = vsel %vm449_vm13, %v531_v53, %v530_v3  ;;  %v723_v57 = vsub.s32 %v719_v41, %v722_v55  ;;  %vm546_vm0 = vcmp.eq.s32.totalorder %v541_v15, 2  ;;  %vm543_vm3 = vcmp.eq.s32.totalorder %v541_v15, 0 }
  0x71   :  { %v535_v45 = vsel %vm448_vm14, %v1037_v4, %v532_v54  ;;  %vm542_vm5 = vcmp.lt.s32.totalorder %v541_v15, 2  ;;  %v746_v37 = vsel %vm661_vm7, %v745_v21, %v721_v10 }
  0x72   :  { %953 = vcosq.f32 %v535_v45  ;;  %v725_v59 = vsub.s32 0, %v723_v57  ;;  %v748_v39 = vsel %vm660_vm8, 0, %v746_v37 }
  0x73   :  { %955 = vsinq.f32 %v535_v45  ;;  %v752_v9 = vadd.s32 3, %v748_v39  ;;  %v858_v7 = vand.u32 3, %v748_v39 }
  0x74   :  { %v912_v49 = vmin.u32 %v725_v59, %v723_v57 }
  0x75   :  { %v753_v42 = vand.u32 3, %v752_v9  ;;  %vm863_vm10 = vcmp.eq.s32.totalorder %v858_v7, 2  ;;  %vm860_vm12 = vcmp.eq.s32.totalorder %v858_v7, 0  ;;  %vm859_vm14 = vcmp.lt.s32.totalorder %v858_v7, 2 }
  0x76   :  { %v727_v62 = vclz %v912_v49 }
  0x77   :  { %vm758_vm9 = vcmp.eq.s32.totalorder %v753_v42, 2  ;;  %vm755_vm11 = vcmp.eq.s32.totalorder %v753_v42, 0  ;;  %vm754_vm13 = vcmp.lt.s32.totalorder %v753_v42, 2 }
  0x78   :  { %v913_v63 = vadd.s32 4294967294, %v727_v62 }
  0x7a   :  { %vm914_vm15 = vcmp.lt.s32.totalorder %v913_v63, 0 }
  0x7b   :  { %v730_v48 = vsel %vm914_vm15, 0, %v913_v63  ;;  %vm751_vm15 = vweird.f32 %v1117_v61 }
  0x7c   :  { %v731_v27 = vsub.s32 32, %v730_v48  ;;  %v732_v1 = vshll.u32 %v723_v57, %v730_v48  ;;  %v735_v5 = vsub.s32 4294967266, %v730_v48 }
  0x7e   :  { %v733_v6 = vshrl.u32 %v715_v38, %v731_v27  ;;  %v736_v11 = vadd.s32 127, %v735_v5 }
  0x7f   :  { %v954_v29 = vpop.eup %953 }
  0x80   :  { %v956_v14 = vpop.eup %955  ;;  %v547_v8 = vxor.u32 2147483648, %v954_v29  ;;  %v734_v58 = vor.u32 %v733_v6, %v732_v1  ;;  %v737_v36 = vshll.u32 %v736_v11, 23 }
  0x81   :  { %v544_v33 = vxor.u32 2147483648, %v956_v14 }
  0x82   :  { %v548_v23 = vsel %vm546_vm0, %v547_v8, %v956_v14  ;;  %v653_v52 = vsel %vm651_vm2, %v547_v8, %v956_v14  ;;  %v738_v18 = vor.u32 4788187, %v737_v36  ;;  %v741_v19 = vcvt.s32.f32 %v734_v58 }
  0x83   :  { %v545_v56 = vsel %vm543_vm3, %v954_v29, %v544_v33  ;;  %v650_v12 = vsel %vm648_vm1, %v954_v29, %v544_v33 }
  0x84   :  { %v549_v13 = vsel %vm542_vm5, %v545_v56, %v548_v23  ;;  %v654_v17 = vsel %vm647_vm6, %v650_v12, %v653_v52  ;;  %v739_v16 = vand.u32 2147483647, %v738_v18 }
  0x85   :  { %v550_v20 = vsel %vm539_vm4, nan, %v549_v13  ;;  %v655_v0 = vsel %vm539_vm4, nan, %v654_v17 }
  0x86   :  { %552 = vst [vmem:[#allocation5 + $0x5] sm:$0x1] %v550_v20  ;;  %657 = vst [vmem:[#allocation5 + $0x6] sm:$0x1] %v655_v0  ;;  %v742_v4 = vmul.f32 %v741_v19, %v739_v16 }
  0x88   :  { %v743_v25 = vxor.u32 2147483648, %v742_v4 }
  0x8a   :  { %v744_v35 = vsel %vm661_vm7, %v743_v25, %v742_v4 }
  0x8b   :  { %v747_v38 = vsel %vm660_vm8, %v1117_v61, %v744_v35 }
  0x8c   :  { %957 = vcosq.f32 %v747_v38 }
  0x8d   :  { %959 = vsinq.f32 %v747_v38 }
  0x99   :  { %v958_v43 = vpop.eup %957 }
  0x9a   :  { %v960_v28 = vpop.eup %959  ;;  %v759_v26 = vxor.u32 2147483648, %v958_v43 }
  0x9b   :  { %v756_v2 = vxor.u32 2147483648, %v960_v28 }
  0x9c   :  { %v760_v30 = vsel %vm758_vm9, %v759_v26, %v960_v28  ;;  %v865_v32 = vsel %vm863_vm10, %v759_v26, %v960_v28 }
  0x9d   :  { %v757_v34 = vsel %vm755_vm11, %v958_v43, %v756_v2  ;;  %v862_v41 = vsel %vm860_vm12, %v958_v43, %v756_v2 }
  0x9e   :  { %v761_v44 = vsel %vm754_vm13, %v757_v34, %v760_v30  ;;  %v866_v24 = vsel %vm859_vm14, %v862_v41, %v865_v32 }
  0x9f   :  { %v762_v22 = vsel %vm751_vm15, nan, %v761_v44  ;;  %v867_v46 = vsel %vm751_vm15, nan, %v866_v24 }
  0xa0   :  { %764 = vst [vmem:[#allocation5 + $0x7] sm:$0x1] %v762_v22  ;;  %869 = vst [vmem:[#allocation5 + $0x8] sm:$0x1] %v867_v46 }
  0xa1   :  { %992 = shalt.err (!%p989_p9)
}
  0xa2   :  { %s1013_s15 = smov 16   ;;  %s1014_s16 = smov 1  }
  0xa3   :  { %881 = dma.vmem_to_hbm [thread:$0]  %s876_s12, 144, %s1337_s1, [#allocation4], %s1013_s15, %s1013_s15, %s1014_s16  }
  0xa4   :  { %1003 = dma.done.wait [#allocation4], 144  }
  0xa5   :  { %1004 = vsyncadd [#allocation4], 4294967152 }
  0xa6   :  { %885 = vsyncpa [#allocation3], 1 }
  0xa7   :  { %886 = vsyncpa [#allocation4], 1 }

</bundles_post_ra>
